<compile_context>
chip_gen: v7x
topology: tpu7x:2x2x1
jax: 0.10.0
libtpu: 0.0.40
codegen_flags: <defaults>
</compile_context>

<pallas_src>
import jax
import jax.numpy as jnp
from jax import lax
from jax.experimental import pallas as pl
from jax.experimental.pallas import tpu as pltpu

# Fixed Sobel weights (identical to the PyTorch module's buffers).
GX1 = ((1.0, 0.0, -1.0), (2.0, 0.0, -2.0), (1.0, 0.0, -1.0))
GX2 = ((-1.0, 0.0, 1.0), (-2.0, 0.0, 2.0), (-1.0, 0.0, 1.0))
GY1 = ((-1.0, -2.0, -1.0), (0.0, 0.0, 0.0), (1.0, 2.0, 1.0))
GY2 = ((1.0, 2.0, 1.0), (0.0, 0.0, 0.0), (-1.0, -2.0, -1.0))
FILTERS = (GX1, GX2, GY1, GY2)


def _sobel_kernel(x_ref, top_ref, bot_ref, o_ref):
    # x_ref  : (B, tH, W)    row tile of the single-channel image
    # top_ref: (B, hR, W)    sublane-aligned block containing the row above the tile
    # bot_ref: (B, hR, W)    sublane-aligned block containing the row below the tile
    # o_ref  : (B, 4, tH, W) outputs [Gx1, Gx2, Gy1, Gy2]
    i = pl.program_id(1)
    n_tiles = pl.num_programs(1)
    B, tH, W = x_ref.shape
    hR = top_ref.shape[1]
    f32 = jnp.float32

    x = x_ref[...].astype(f32)

    # 1-row halos; zeroed at the image border (vertical part of padding=1).
    top = top_ref[:, hR - 1:hR, :].astype(f32) * jnp.where(i == 0, 0.0, 1.0)
    bot = bot_ref[:, 0:1, :].astype(f32) * jnp.where(i == n_tiles - 1, 0.0, 1.0)

    # Row-padded tile: rows correspond to original rows [i*tH-1, (i+1)*tH].
    xr = jnp.concatenate([top, x, bot], axis=1)                 # (B, tH+2, W)

    # Horizontal neighbours with a zero border column (horizontal padding=1).
    zcol = jnp.zeros((B, tH + 2, 1), f32)
    xl = jnp.concatenate([zcol, xr[:, :, :W - 1]], axis=2)      # X[.., j-1]
    xrt = jnp.concatenate([xr[:, :, 1:], zcol], axis=2)         # X[.., j+1]

    # Separable horizontal passes.
    hdiff = xl - xrt                    # [1, 0, -1]
    hsm = xl + 2.0 * xr + xrt           # [1, 2, 1]

    # Separable vertical passes (sublane-shifted slices of VMEM temporaries).
    gx1 = hdiff[:, 0:tH, :] + 2.0 * hdiff[:, 1:tH + 1, :] + hdiff[:, 2:tH + 2, :]
    gy1 = hsm[:, 2:tH + 2, :] - hsm[:, 0:tH, :]

    od = o_ref.dtype
    o_ref[:, 0, :, :] = gx1.astype(od)
    o_ref[:, 1, :, :] = (-gx1).astype(od)      # Gx2 == -Gx1
    o_ref[:, 2, :, :] = gy1.astype(od)
    o_ref[:, 3, :, :] = (-gy1).astype(od)      # Gy2 == -Gy1


def _choose_tiles(N, H, W, budget_bytes=6 * 1024 * 1024):
    """Pick (batch_block, row_tile) so the per-step working set stays small."""
    per_elem = 64  # ~16 live f32 (B,tH,W)-sized arrays: double-buffered I/O + temps
    per_image = per_elem * H * W
    # Batch block: largest divisor of N whose whole-image step fits the budget.
    b = max(1, min(N, budget_bytes // max(1, per_image)))
    while N % b != 0:
        b -= 1
    if per_image * b <= budget_bytes:
        return b, H
    # A single whole image is too big: tile rows (multiple-of-8 divisor of H).
    max_rows = max(8, (budget_bytes // (per_elem * W)) // 8 * 8)
    t = min(max_rows, (H // 8) * 8)
    while t >= 8:
        if H % t == 0:
            return 1, t
        t -= 8
    return 1, H  # fallback: whole image per step


def sobel(x):
    """x: (N, 1, H, W) float -> (N, 4, H, W) float32 Sobel filter bank."""
    N, C, H, W = x.shape
    assert C == 1, "Sobel module expects a single input channel"
    x2d = x[:, 0, :, :].astype(jnp.float32)   # (N, H, W); no HBM-side padding

    B_blk, tH = _choose_tiles(N, H, W)
    nb, nt = N // B_blk, H // tH
    hR = min(8, H)                   # sublane-aligned halo block height
    n_hblk = pl.cdiv(H, hR)          # number of halo blocks along H
    th_b = max(1, tH // hR)          # row tile size in halo-block units

    def main_map(b, i):
        return (b, i, 0)

    def top_map(b, i):               # block holding row i*tH - 1 (clamped; masked at i==0)
        return (b, jnp.maximum(i * th_b - 1, 0), 0)

    def bot_map(b, i):               # block holding row (i+1)*tH (clamped; masked at last tile)
        return (b, jnp.minimum((i + 1) * th_b, n_hblk - 1), 0)

    step_bytes = 64 * B_blk * tH * W
    vmem_limit = int(min(64 * 1024 * 1024, max(32 * 1024 * 1024, 4 * step_bytes)))

    return pl.pallas_call(
        _sobel_kernel,
        out_shape=jax.ShapeDtypeStruct((N, 4, H, W), jnp.float32),
        grid_spec=pltpu.PrefetchScalarGridSpec(
            num_scalar_prefetch=0,
            grid=(nb, nt),
            in_specs=[
                pl.BlockSpec((B_blk, tH, W), main_map),
                pl.BlockSpec((B_blk, hR, W), top_map),
                pl.BlockSpec((B_blk, hR, W), bot_map),
            ],
            out_specs=pl.BlockSpec((B_blk, 4, tH, W), lambda b, i: (b, 0, i, 0)),
        ),
        compiler_params=pltpu.CompilerParams(
            dimension_semantics=("parallel", "parallel"),
            vmem_limit_bytes=vmem_limit),
    )(x2d, x2d, x2d)


def _sobel_reference(x):
    """Pure-JAX reference using lax convolution (cross-correlation, SAME pad)."""
    w = jnp.array(FILTERS, dtype=jnp.float32)[:, None, :, :]  # (4, 1, 3, 3) OIHW
    return lax.conv_general_dilated(
        x.astype(jnp.float32), w, window_strides=(1, 1),
        padding=((1, 1), (1, 1)),
        dimension_numbers=("NCHW", "OIHW", "NCHW"))


if __name__ == "__main__":
    key = jax.random.PRNGKey(0)
    x = jax.random.normal(key, (2, 1, 16, 16), dtype=jnp.float32)

    out = sobel(x)
    jax.block_until_ready(out)

    ref = _sobel_reference(x)
    assert out.shape == (2, 4, 16, 16)
    assert jnp.allclose(out, ref, atol=1e-5, rtol=1e-5)

    print("KERNEL_OK")
</pallas_src>

<mosaic_0001>
module attributes {stable_mosaic.version = 11 : i64} {
  func.func @_sobel_kernel(%arg0: i32, %arg1: i32, %arg2: memref<2x16x16xf32, #tpu.memory_space<vmem>>, %arg3: memref<2x8x16xf32, #tpu.memory_space<vmem>>, %arg4: memref<2x8x16xf32, #tpu.memory_space<vmem>>, %arg5: memref<2x4x16x16xf32, #tpu.memory_space<vmem>>) attributes {dimension_semantics = [#tpu.dimension_semantics<parallel>, #tpu.dimension_semantics<parallel>], iteration_bounds = array<i64: 1, 1>, scalar_prefetch = 0 : i64, scratch_operands = 0 : i64, tpu.core_type = #tpu.core_type<tc>, window_params = [{transform_indices = @transform_0, window_bounds = array<i64: 2, 16, 16>}, {transform_indices = @transform_1, window_bounds = array<i64: 2, 8, 16>}, {transform_indices = @transform_2, window_bounds = array<i64: 2, 8, 16>}, {transform_indices = @transform_3, window_bounds = array<i64: 2, 4, 16, 16>}]} {
    %c0 = arith.constant 0 : index
    %c0_0 = arith.constant 0 : index
    %c0_1 = arith.constant 0 : index
    %0 = vector.load %arg2[%c0, %c0_0, %c0_1] : memref<2x16x16xf32, #tpu.memory_space<vmem>>, vector<2x16x16xf32>
    %c0_2 = arith.constant 0 : index
    %c7 = arith.constant 7 : index
    %c0_3 = arith.constant 0 : index
    %1 = vector.load %arg3[%c0_2, %c7, %c0_3] : memref<2x8x16xf32, #tpu.memory_space<vmem>>, vector<2x1x16xf32>
    %c0_i32 = arith.constant 0 : i32
    %2 = arith.cmpi eq, %arg1, %c0_i32 : i32
    %cst = arith.constant 0.000000e+00 : f32
    %cst_4 = arith.constant 1.000000e+00 : f32
    %3 = arith.select %2, %cst, %cst_4 : f32
    %4 = vector.broadcast %3 : f32 to vector<2x1x16xf32>
    %5 = arith.mulf %1, %4 : vector<2x1x16xf32>
    %c0_5 = arith.constant 0 : index
    %c0_6 = arith.constant 0 : index
    %c0_7 = arith.constant 0 : index
    %6 = vector.load %arg4[%c0_5, %c0_6, %c0_7] : memref<2x8x16xf32, #tpu.memory_space<vmem>>, vector<2x1x16xf32>
    %c0_i32_8 = arith.constant 0 : i32
    %7 = arith.cmpi eq, %arg1, %c0_i32_8 : i32
    %cst_9 = arith.constant 0.000000e+00 : f32
    %cst_10 = arith.constant 1.000000e+00 : f32
    %8 = arith.select %7, %cst_9, %cst_10 : f32
    %9 = vector.broadcast %8 : f32 to vector<2x1x16xf32>
    %10 = arith.mulf %6, %9 : vector<2x1x16xf32>
    %11 = tpu.concatenate %5, %0, %10 in 1 : vector<2x1x16xf32>, vector<2x16x16xf32>, vector<2x1x16xf32> -> vector<2x18x16xf32>
    %cst_11 = arith.constant 0.000000e+00 : f32
    %12 = vector.broadcast %cst_11 : f32 to vector<2x18x1xf32>
    %13 = vector.extract_strided_slice %11 {offsets = [0, 0, 0], sizes = [2, 18, 15], strides = [1, 1, 1]} : vector<2x18x16xf32> to vector<2x18x15xf32>
    %14 = tpu.concatenate %12, %13 in 2 : vector<2x18x1xf32>, vector<2x18x15xf32> -> vector<2x18x16xf32>
    %15 = vector.extract_strided_slice %11 {offsets = [0, 0, 1], sizes = [2, 18, 15], strides = [1, 1, 1]} : vector<2x18x16xf32> to vector<2x18x15xf32>
    %16 = tpu.concatenate %15, %12 in 2 : vector<2x18x15xf32>, vector<2x18x1xf32> -> vector<2x18x16xf32>
    %17 = arith.subf %14, %16 : vector<2x18x16xf32>
    %cst_12 = arith.constant 2.000000e+00 : f32
    %18 = vector.broadcast %cst_12 : f32 to vector<2x18x16xf32>
    %19 = arith.mulf %18, %11 : vector<2x18x16xf32>
    %20 = arith.addf %14, %19 : vector<2x18x16xf32>
    %21 = arith.addf %20, %16 : vector<2x18x16xf32>
    %22 = vector.extract_strided_slice %17 {offsets = [0, 0, 0], sizes = [2, 16, 16], strides = [1, 1, 1]} : vector<2x18x16xf32> to vector<2x16x16xf32>
    %23 = vector.extract_strided_slice %17 {offsets = [0, 1, 0], sizes = [2, 16, 16], strides = [1, 1, 1]} : vector<2x18x16xf32> to vector<2x16x16xf32>
    %cst_13 = arith.constant 2.000000e+00 : f32
    %24 = vector.broadcast %cst_13 : f32 to vector<2x16x16xf32>
    %25 = arith.mulf %24, %23 : vector<2x16x16xf32>
    %26 = arith.addf %22, %25 : vector<2x16x16xf32>
    %27 = vector.extract_strided_slice %17 {offsets = [0, 2, 0], sizes = [2, 16, 16], strides = [1, 1, 1]} : vector<2x18x16xf32> to vector<2x16x16xf32>
    %28 = arith.addf %26, %27 : vector<2x16x16xf32>
    %29 = vector.extract_strided_slice %21 {offsets = [0, 2, 0], sizes = [2, 16, 16], strides = [1, 1, 1]} : vector<2x18x16xf32> to vector<2x16x16xf32>
    %30 = vector.extract_strided_slice %21 {offsets = [0, 0, 0], sizes = [2, 16, 16], strides = [1, 1, 1]} : vector<2x18x16xf32> to vector<2x16x16xf32>
    %31 = arith.subf %29, %30 : vector<2x16x16xf32>
    %c0_14 = arith.constant 0 : index
    %c0_15 = arith.constant 0 : index
    %c0_16 = arith.constant 0 : index
    %c0_17 = arith.constant 0 : index
    %32 = vector.load %arg5[%c0_14, %c0_15, %c0_16, %c0_17] : memref<2x4x16x16xf32, #tpu.memory_space<vmem>>, vector<2x1x16x16xf32>
    %33 = vector.shape_cast %32 : vector<2x1x16x16xf32> to vector<2x16x16xf32>
    %34 = vector.shape_cast %28 : vector<2x16x16xf32> to vector<2x1x16x16xf32>
    tpu.vector_store %arg5[%c0_14, %c0_15, %c0_16, %c0_17], %34 {strides = array<i32>} : memref<2x4x16x16xf32, #tpu.memory_space<vmem>>, vector<2x1x16x16xf32>,
    %cst_18 = arith.constant 0.000000e+00 : f32
    %35 = vector.broadcast %cst_18 : f32 to vector<2x16x16xf32>
    %36 = arith.subf %35, %28 : vector<2x16x16xf32>
    %c0_19 = arith.constant 0 : index
    %c1 = arith.constant 1 : index
    %c0_20 = arith.constant 0 : index
    %c0_21 = arith.constant 0 : index
    %37 = vector.load %arg5[%c0_19, %c1, %c0_20, %c0_21] : memref<2x4x16x16xf32, #tpu.memory_space<vmem>>, vector<2x1x16x16xf32>
    %38 = vector.shape_cast %37 : vector<2x1x16x16xf32> to vector<2x16x16xf32>
    %39 = vector.shape_cast %36 : vector<2x16x16xf32> to vector<2x1x16x16xf32>
    tpu.vector_store %arg5[%c0_19, %c1, %c0_20, %c0_21], %39 {strides = array<i32>} : memref<2x4x16x16xf32, #tpu.memory_space<vmem>>, vector<2x1x16x16xf32>,
    %c0_22 = arith.constant 0 : index
    %c2 = arith.constant 2 : index
    %c0_23 = arith.constant 0 : index
    %c0_24 = arith.constant 0 : index
    %40 = vector.load %arg5[%c0_22, %c2, %c0_23, %c0_24] : memref<2x4x16x16xf32, #tpu.memory_space<vmem>>, vector<2x1x16x16xf32>
    %41 = vector.shape_cast %40 : vector<2x1x16x16xf32> to vector<2x16x16xf32>
    %42 = vector.shape_cast %31 : vector<2x16x16xf32> to vector<2x1x16x16xf32>
    tpu.vector_store %arg5[%c0_22, %c2, %c0_23, %c0_24], %42 {strides = array<i32>} : memref<2x4x16x16xf32, #tpu.memory_space<vmem>>, vector<2x1x16x16xf32>,
    %cst_25 = arith.constant 0.000000e+00 : f32
    %43 = vector.broadcast %cst_25 : f32 to vector<2x16x16xf32>
    %44 = arith.subf %43, %31 : vector<2x16x16xf32>
    %c0_26 = arith.constant 0 : index
    %c3 = arith.constant 3 : index
    %c0_27 = arith.constant 0 : index
    %c0_28 = arith.constant 0 : index
    %45 = vector.load %arg5[%c0_26, %c3, %c0_27, %c0_28] : memref<2x4x16x16xf32, #tpu.memory_space<vmem>>, vector<2x1x16x16xf32>
    %46 = vector.shape_cast %45 : vector<2x1x16x16xf32> to vector<2x16x16xf32>
    %47 = vector.shape_cast %44 : vector<2x16x16xf32> to vector<2x1x16x16xf32>
    tpu.vector_store %arg5[%c0_26, %c3, %c0_27, %c0_28], %47 {strides = array<i32>} : memref<2x4x16x16xf32, #tpu.memory_space<vmem>>, vector<2x1x16x16xf32>,
    return
  }
  func.func @transform_0(%arg0: i32, %arg1: i32) -> (i32, i32, i32) {
    %c0_i32 = arith.constant 0 : i32
    %c0_i32_0 = arith.constant 0 : i32
    return %arg0, %arg1, %c0_i32 : i32, i32, i32
  }
  func.func @transform_1(%arg0: i32, %arg1: i32) -> (i32, i32, i32) {
    %c2_i32 = arith.constant 2 : i32
    %0 = arith.muli %arg1, %c2_i32 : i32
    %c1_i32 = arith.constant 1 : i32
    %1 = arith.subi %0, %c1_i32 : i32
    %c0_i32 = arith.constant 0 : i32
    %2 = arith.maxsi %1, %c0_i32 : i32
    %c0_i32_0 = arith.constant 0 : i32
    %c0_i32_1 = arith.constant 0 : i32
    return %arg0, %2, %c0_i32_0 : i32, i32, i32
  }
  func.func @transform_2(%arg0: i32, %arg1: i32) -> (i32, i32, i32) {
    %c1_i32 = arith.constant 1 : i32
    %0 = arith.addi %arg1, %c1_i32 : i32
    %c2_i32 = arith.constant 2 : i32
    %1 = arith.muli %0, %c2_i32 : i32
    %c1_i32_0 = arith.constant 1 : i32
    %2 = arith.minsi %1, %c1_i32_0 : i32
    %c0_i32 = arith.constant 0 : i32
    %c0_i32_1 = arith.constant 0 : i32
    return %arg0, %2, %c0_i32 : i32, i32, i32
  }
  func.func @transform_3(%arg0: i32, %arg1: i32) -> (i32, i32, i32, i32) {
    %c0_i32 = arith.constant 0 : i32
    %c0_i32_0 = arith.constant 0 : i32
    %c0_i32_1 = arith.constant 0 : i32
    return %arg0, %c0_i32, %arg1, %c0_i32_0 : i32, i32, i32, i32
  }
}

</mosaic_0001>

<bundles_post_ra>
// kernel: tpu_custom_call.1
= control target key start
LH: loop header
LB: loop body
LE: loop exit
PB: predicated region body
PF: predicated region fallthrough
CT: control target
= control target key end

     0   :  { %8 = vsyncpa [#allocation3], 0  ;;  %s597_s0 = inlined_call_operand.hbm [shape: f32[2,16,16], index: 0, kind: input, shape index: {}]   ;;  %s598_s1 = inlined_call_operand.hbm [shape: f32[2,16,16], index: 1, kind: input, shape index: {}]   ;;  %s599_s2 = inlined_call_operand.hbm [shape: f32[2,16,16], index: 2, kind: input, shape index: {}]   ;;  %s600_s3 = inlined_call_operand.hbm [shape: f32[2,4,16,16], index: 3, kind: output, shape index: {}]  }
   0x1   :  { %9 = vsyncpa [#allocation6], 0 }
   0x2   :  { %10 = vsyncpa [#allocation4], 0  ;;  %s439_s12 = smov [#allocation5]   ;;  %s440_s14 = smov [#allocation2]  }
   0x3   :  { %s34_s13 = sshll.u32 %s439_s12, 4  ;;  %s16_s15 = sshll.u32 %s440_s14, 4  ;;  %s35_s13 = int_to_ptr.vmem [resolvable:$true] %s34_s13  ;;  %s17_s15 = int_to_ptr.vmem [resolvable:$true] %s16_s15 }
   0x4   :  { %s342_s18 = scalar_lea.hbm %s598_s1, 256  ;;  %s344_s23 = scalar_lea.hbm %s598_s1, 512 }
   0x5   :  { %p343_p0 = scmp.ne.s32.totalorder %s598_s1, %s342_s18  ;;  %p345_p1 = scmp.lt.u32.totalorder %s344_s23, %s342_s18 }
   0x6   :  { %p346_p2 = scmp.lt.u32.totalorder %s342_s18, %s598_s1 }
   0x8   :  { %p347_p3 = por %p346_p2, %p345_p1 }
   0xa   :  { %p348_p4 = pnand %p347_p3, %p343_p0 }
   0xc   :  { %351 = shalt.err (!%p348_p4)
}
   0xd   :  { %s352_s26 = scalar_lea.vmem %s35_s13, 256  ;;  %p357_p6 = scmp.lt.s32.totalorder %s35_s13, %s35_s13 }
   0xe   :  { %p353_p5 = scmp.ne.s32.totalorder %s35_s13, %s352_s26  ;;  %p358_p7 = scmp.lt.s32.totalorder %s352_s26, %s352_s26 }
  0x10   :  { %p359_p8 = por %p358_p7, %p357_p6 }
  0x12   :  { %p360_p9 = pnand %p359_p8, %p353_p5 }
  0x14   :  { %363 = shalt.err (!%p360_p9)
}
  0x15   :  { %s441_s27 = smov 256   ;;  %s442_s28 = smov 128  }
  0x16   :  { %s443_s29 = smov 8   ;;  %s364_s7 = scalar_lea.hbm %s597_s0, 512 }
  0x17   :  { %40 = dma.hbm_to_vmem [thread:$0]  %s598_s1, 256, %s35_s13, [#allocation6], %s441_s27, %s442_s28, %s443_s29  }
  0x18   :  { %p365_p10 = scmp.ne.s32.totalorder %s597_s0, %s364_s7  ;;  %p368_p11 = scmp.lt.u32.totalorder %s364_s7, %s597_s0 }
  0x1a   :  { %p370_p12 = pnand %p368_p11, %p365_p10 }
  0x1c   :  { %373 = shalt.err (!%p370_p12)
}
  0x1d   :  { %s374_s12 = scalar_lea.vmem %s17_s15, 512  ;;  %p379_p0 = scmp.lt.s32.totalorder %s17_s15, %s17_s15 }
  0x1e   :  { %p375_p13 = scmp.ne.s32.totalorder %s17_s15, %s374_s12  ;;  %p380_p1 = scmp.lt.s32.totalorder %s374_s12, %s374_s12 }
  0x20   :  { %p381_p2 = por %p380_p1, %p379_p0 }
  0x22   :  { %p382_p3 = pnand %p381_p2, %p375_p13 }
  0x24   :  { %385 = shalt.err (!%p382_p3)
}
  0x25   :  { %22 = dma.hbm_to_vmem [thread:$0]  %s597_s0, 512, %s17_s15, [#allocation3], %s442_s28, %s442_s28, %s443_s29  }
  0x26   :  { %s51_s17 = scalar_lea.hbm %s599_s2, 128  ;;  %s444_s18 = smov [#allocation7]  }
  0x27   :  { %s52_s19 = sshll.u32 %s444_s18, 4  ;;  %s410_s22 = scalar_lea.hbm %s599_s2, 384  ;;  %s53_s19 = int_to_ptr.vmem [resolvable:$true] %s52_s19 }
  0x28   :  { %p387_p4 = scmp.ne.s32.totalorder %s51_s17, %s410_s22  ;;  %s388_s25 = scalar_lea.hbm %s599_s2, 512 }
  0x29   :  { %p389_p5 = scmp.lt.u32.totalorder %s51_s17, %s599_s2  ;;  %p390_p6 = scmp.lt.u32.totalorder %s388_s25, %s410_s22 }
  0x2a   :  { %p392_p8 = scmp.lt.u32.totalorder %s410_s22, %s51_s17 }
  0x2b   :  { %p391_p7 = por %p390_p6, %p389_p5 }
  0x2d   :  { %p393_p9 = por %p392_p8, %p391_p7 }
  0x2f   :  { %p394_p10 = pnand %p393_p9, %p387_p4 }
  0x31   :  { %397 = shalt.err (!%p394_p10)
}
  0x32   :  { %s398_s0 = scalar_lea.vmem %s53_s19, 256  ;;  %p403_p12 = scmp.lt.s32.totalorder %s53_s19, %s53_s19 }
  0x33   :  { %p399_p11 = scmp.ne.s32.totalorder %s53_s19, %s398_s0  ;;  %p404_p13 = scmp.lt.s32.totalorder %s398_s0, %s398_s0 }
  0x35   :  { %p405_p0 = por %p404_p13, %p403_p12 }
  0x37   :  { %p406_p1 = pnand %p405_p0, %p399_p11 }
  0x39   :  { %409 = shalt.err (!%p406_p1)
}
  0x3a   :  { %58 = dma.hbm_to_vmem [thread:$0]  %s51_s17, 256, %s53_s19, [#allocation6], %s441_s27, %s442_s28, %s443_s29  }
  0x3b   :  { %433 = dma.done.wait [#allocation3], 512  }
  0x3c   :  { %434 = vsyncadd [#allocation3], 4294966784 }
  0x3d   :  { %435 = dma.done.wait [#allocation6], 512  }
  0x3e   :  { %436 = vsyncadd [#allocation6], 4294966784  ;;  %v78_v0 = vld [vmem:[#allocation2 + $0x10] sm:$0xff]  ;;  %v81_v1 = vld [vmem:[#allocation5 + $0xf] sm:$0x1]  ;;  %vm95_vm0 = vcmask 1040384  }
  0x3f   :  { %v76_v2 = vld [vmem:[#allocation2] sm:$0xff]  ;;  %v86_v3 = vmul.f32 0.0, %v81_v1  ;;  %v99_v4 = vrot.slane %v78_v0, 7  ;;  %v77_v7 = vld [vmem:[#allocation2 + $0x8] sm:$0xff]  ;;  %v87_v10 = vld [vmem:[#allocation7] sm:$0x1] }
  0x40   :  { %v80_v5 = vld [vmem:[#allocation5 + $0x7] sm:$0x1]  ;;  %v96_v6 = vrot.slane %v76_v2, 7  ;;  %v97_v9 = vrot.slane %v77_v7, 7  ;;  %v89_v12 = vmul.f32 0.0, %v87_v10  ;;  %v79_v13 = vld [vmem:[#allocation2 + $0x18] sm:$0xff] }
  0x41   :  { %v85_v8 = vmul.f32 0.0, %v80_v5  ;;  %v115_v11 = vsel %vm95_vm0, %v86_v3, %v99_v4  ;;  %v88_v14 = vld [vmem:[#allocation7 + $0x8] sm:$0x1]  ;;  %s445_s2 = smov 1   ;;  %v100_v19 = vrot.slane %v79_v13, 7  ;;  %s446_s15 = smov 127  }
  0x42   :  { %128 = vrot.lane.b32.xlu1 %v115_v11, %s445_s2  ;;  %v98_v16 = vsel %vm95_vm0, %v96_v6, %v97_v9  ;;  %v110_v17 = vrot.slane %v89_v12, 7  ;;  %v90_v18 = vmul.f32 0.0, %v88_v14  ;;  %vm165_vm1 = vcmask 121856   ;;  %s447_s27 = smov [#allocation8]  }
  0x43   :  { %v114_v15 = vsel %vm95_vm0, %v85_v8, %v96_v6  ;;  %v101_v22 = vsel %vm95_vm0, %v99_v4, %v100_v19  ;;  %vm140_vm2 = vcmask 7168   ;;  %v179_v30 = vmul.f32 2.0, %v98_v16  ;;  %s316_s4 = sshll.u32 %s447_s27, 4  ;;  %s317_s4 = int_to_ptr.vmem [resolvable:$true] %s316_s4 }
  0x44   :  { %122 = vrot.lane.b32.xlu0 %v114_v15, %s445_s2  ;;  %v116_v20 = vsel %vm95_vm0, %v97_v9, %v110_v17  ;;  %v111_v21 = vrot.slane %v90_v18, 7  ;;  %v178_v32 = vmul.f32 2.0, %v114_v15  ;;  %v181_v36 = vmul.f32 2.0, %v115_v11  ;;  %s411_s5 = scalar_lea.vmem %s317_s4, 2048  ;;  %p416_p3 = scmp.lt.s32.totalorder %s317_s4, %s317_s4 }
  0x45   :  { %v180_v39 = vmul.f32 2.0, %v116_v20  ;;  %v182_v40 = vmul.f32 2.0, %v101_v22  ;;  %vm208_vm3 = vcmask 1046528   ;;  %vm233_vm4 = vcmask 1045504   ;;  %p412_p2 = scmp.ne.s32.totalorder %s317_s4, %s411_s5  ;;  %p417_p4 = scmp.lt.s32.totalorder %s411_s5, %s411_s5 }
  0x46   :  { %149 = vrot.lane.b32.xlu1 %v98_v16, %s446_s15  ;;  %v117_v23 = vsel %vm95_vm0, %v100_v19, %v111_v21  ;;  %vm290_vm5 = vcmask 130050   ;;  %vm293_vm6 = vcmask 123904   ;;  %vm256_vm7 = vcmask 1041408  }
  0x47   :  { %v183_v46 = vmul.f32 2.0, %v117_v23  ;;  %vm275_vm8 = vcmask 130048   ;;  %p418_p5 = por %p417_p4, %p416_p3 }
  0x48   :  { %124 = vrot.lane.b32.xlu0 %v98_v16, %s445_s2 }
  0x49   :  { %p419_p6 = pnand %p418_p5, %p412_p2 }
  0x4a   :  { %126 = vrot.lane.b32.xlu1 %v116_v20, %s445_s2 }
  0x4c   :  { %130 = vrot.lane.b32.xlu0 %v101_v22, %s445_s2 }
  0x4e   :  { %132 = vrot.lane.b32.xlu1 %v117_v23, %s445_s2 }
  0x50   :  { %147 = vrot.lane.b32.xlu0 %v114_v15, %s446_s15 }
  0x52   :  { %153 = vrot.lane.b32.xlu1 %v115_v11, %s446_s15 }
  0x54   :  { %151 = vrot.lane.b32.xlu0 %v116_v20, %s446_s15 }
  0x56   :  { %157 = vrot.lane.b32.xlu1 %v117_v23, %s446_s15 }
  0x58   :  { %155 = vrot.lane.b32.xlu0 %v101_v22, %s446_s15 }
  0xb4   :  { %v129_v24 = vpop.permute.xlu1 %128 }
  0xb5   :  { %v144_v37 = vsel %vm140_vm2, 0.0, %v129_v24 }
  0xb6   :  { %v123_v25 = vpop.permute.xlu0 %122  ;;  %v187_v48 = vadd.f32 %v181_v36, %v144_v37 }
  0xb7   :  { %v141_v34 = vsel %vm140_vm2, 0.0, %v123_v25 }
  0xb8   :  { %v150_v26 = vpop.permute.xlu1 %149  ;;  %v184_v42 = vadd.f32 %v178_v32, %v141_v34 }
  0xb9   :  { %v167_v28 = vsel %vm165_vm1, %v150_v26, 0.0 }
  0xba   :  { %v125_v27 = vpop.permute.xlu0 %124 }
  0xbb   :  { %v142_v29 = vsel %vm140_vm2, 0.0, %v125_v27 }
  0xbc   :  { %v127_v31 = vpop.permute.xlu1 %126  ;;  %v525_v35 = vsub.f32 %v142_v29, %v167_v28  ;;  %v185_v38 = vadd.f32 %v179_v30, %v142_v29 }
  0xbd   :  { %v143_v43 = vsel %vm140_vm2, 0.0, %v127_v31 }
  0xbe   :  { %v131_v33 = vpop.permute.xlu0 %130  ;;  %v197_v45 = vmul.f32 2.0, %v525_v35  ;;  %v533_v51 = vadd.f32 %v185_v38, %v167_v28  ;;  %v235_v52 = vrot.slane %v525_v35, 2  ;;  %v186_v53 = vadd.f32 %v180_v39, %v143_v43 }
  0xbf   :  { %v145_v54 = vsel %vm140_vm2, 0.0, %v131_v33 }
  0xc0   :  { %v133_v41 = vpop.permute.xlu1 %132  ;;  %v210_v61 = vrot.slane %v197_v45, 1  ;;  %v188_v1 = vadd.f32 %v182_v40, %v145_v54  ;;  %v258_v8 = vrot.slane %v533_v51, 6 }
  0xc1   :  { %v146_v5 = vsel %vm140_vm2, 0.0, %v133_v41 }
  0xc2   :  { %v148_v44 = vpop.permute.xlu0 %147  ;;  %v189_v27 = vadd.f32 %v183_v46, %v146_v5 }
  0xc3   :  { %v166_v47 = vsel %vm165_vm1, %v148_v44, 0.0 }
  0xc4   :  { %v172_v49 = vsub.f32 %v141_v34, %v166_v47  ;;  %v531_v50 = vadd.f32 %v184_v42, %v166_v47  ;;  %v154_v55 = vpop.permute.xlu1 %153 }
  0xc5   :  { %v169_v59 = vsel %vm165_vm1, %v154_v55, 0.0 }
  0xc6   :  { %v196_v56 = vmul.f32 2.0, %v172_v49  ;;  %v234_v57 = vrot.slane %v172_v49, 2  ;;  %v257_v58 = vrot.slane %v531_v50, 6  ;;  %v152_v60 = vpop.permute.xlu0 %151  ;;  %v539_v62 = vsub.f32 %v144_v37, %v169_v59 }
  0xc7   :  { %v193_v63 = vadd.f32 %v187_v48, %v169_v59  ;;  %v168_v0 = vsel %vm165_vm1, %v152_v60, 0.0 }
  0xc8   :  { %v209_v2 = vrot.slane %v196_v56, 1  ;;  %v269_v3 = vsub.f32 %v531_v50, %v257_v58  ;;  %v174_v4 = vsub.f32 %v143_v43, %v168_v0  ;;  %v192_v7 = vadd.f32 %v186_v53, %v168_v0  ;;  %v158_v9 = vpop.permute.xlu1 %157 }
  0xc9   :  { %v260_v6 = vrot.slane %v193_v63, 6  ;;  %v236_v11 = vsel %vm233_vm4, %v234_v57, %v235_v52  ;;  %v199_v16 = vmul.f32 2.0, %v539_v62  ;;  %v171_v21 = vsel %vm165_vm1, %v158_v9, 0.0 }
  0xca   :  { %v211_v10 = vsel %vm208_vm3, %v209_v2, %v210_v61  ;;  %291 = vst.msk [vmem:[#allocation8 + $0x1e] sm:$0xfc] %vm290_vm5, %v269_v3  ;;  %v298_v12 = vsub.f32 0.0, %v269_v3  ;;  %v198_v13 = vmul.f32 2.0, %v174_v4  ;;  %v156_v14 = vpop.permute.xlu0 %155  ;;  %v271_v18 = vsub.f32 %v192_v7, %v258_v8 }
  0xcb   :  { %v223_v15 = vadd.f32 %v211_v10, %v172_v49  ;;  %v272_v17 = vsub.f32 %v193_v63, %v260_v6  ;;  %v237_v20 = vrot.slane %v174_v4, 2  ;;  %v170_v22 = vsel %vm165_vm1, %v156_v14, 0.0 }
  0xcc   :  { %305 = vst.msk [vmem:[#allocation8 + $0x2e] sm:$0xfc] %vm290_vm5, %v298_v12  ;;  %v212_v19 = vrot.slane %v198_v13, 1  ;;  %v300_v25 = vsub.f32 0.0, %v271_v18  ;;  %v177_v26 = vsub.f32 %v146_v5, %v171_v21  ;;  %v176_v29 = vsub.f32 %v145_v54, %v170_v22 }
  0xcd   :  { %v248_v23 = vadd.f32 %v236_v11, %v223_v15  ;;  %295 = vst.msk [vmem:[#allocation8 + $0x5e] sm:$0xfc] %vm290_vm5, %v272_v17  ;;  %v301_v24 = vsub.f32 0.0, %v272_v17  ;;  %v194_v30 = vadd.f32 %v188_v1, %v170_v22  ;;  %v214_v32 = vrot.slane %v199_v16, 1 }
  0xce   :  { %294 = vst.msk [vmem:[#allocation8 + $0x2e] sm:$0x3] %vm293_vm6, %v271_v18  ;;  %v213_v28 = vsel %vm208_vm3, %v210_v61, %v212_v19  ;;  %307 = vst.msk [vmem:[#allocation8 + $0x3e] sm:$0x3] %vm293_vm6, %v300_v25  ;;  %v201_v34 = vmul.f32 2.0, %v177_v26  ;;  %v238_v36 = vsel %vm233_vm4, %v235_v52, %v237_v20  ;;  %v200_v37 = vmul.f32 2.0, %v176_v29 }
  0xcf   :  { %276 = vst.msk [vmem:[#allocation8] sm:$0xff] %vm275_vm8, %v248_v23  ;;  %v280_v31 = vsub.f32 0.0, %v248_v23  ;;  %v224_v33 = vadd.f32 %v213_v28, %v525_v35  ;;  %v259_v38 = vsel %vm256_vm7, %v257_v58, %v258_v8  ;;  %v261_v39 = vrot.slane %v194_v30, 6 }
  0xd0   :  { %308 = vst.msk [vmem:[#allocation8 + $0x6e] sm:$0xfc] %vm290_vm5, %v301_v24  ;;  %v195_v41 = vadd.f32 %v189_v27, %v171_v21  ;;  %v217_v42 = vrot.slane %v201_v34, 1  ;;  %v270_v43 = vsub.f32 %v533_v51, %v259_v38  ;;  %v242_v44 = vrot.slane %v177_v26, 2 }
  0xd1   :  { %285 = vst.msk [vmem:[#allocation8 + $0x10] sm:$0xff] %vm275_vm8, %v280_v31  ;;  %v249_v40 = vadd.f32 %v238_v36, %v224_v33  ;;  %v215_v45 = vrot.slane %v200_v37, 1  ;;  %v240_v46 = vrot.slane %v176_v29, 2  ;;  %v262_v35 = vsel %vm256_vm7, %v260_v6, %v261_v39 }
  0xd2   :  { %v273_v48 = vsub.f32 %v194_v30, %v262_v35  ;;  %v274_v49 = vsub.f32 %v195_v41, %v261_v39  ;;  %292 = vst.msk [vmem:[#allocation8 + $0x26] sm:$0xff] %vm275_vm8, %v270_v43  ;;  %v299_v50 = vsub.f32 0.0, %v270_v43  ;;  %v239_v52 = vrot.slane %v539_v62, 2 }
  0xd3   :  { %277 = vst.msk [vmem:[#allocation8 + $0x8] sm:$0xff] %vm275_vm8, %v249_v40  ;;  %v281_v47 = vsub.f32 0.0, %v249_v40  ;;  %v216_v53 = vsel %vm208_vm3, %v214_v32, %v215_v45  ;;  %v218_v54 = vsel %vm208_vm3, %v215_v45, %v217_v42  ;;  %v243_v59 = vsel %vm233_vm4, %v240_v46, %v242_v44 }
  0xd4   :  { %v225_v51 = vadd.f32 %v216_v53, %v539_v62  ;;  %v226_v55 = vadd.f32 %v218_v54, %v176_v29  ;;  %296 = vst.msk [vmem:[#allocation8 + $0x66] sm:$0xff] %vm275_vm8, %v273_v48  ;;  %v302_v56 = vsub.f32 0.0, %v273_v48  ;;  %v303_v57 = vsub.f32 0.0, %v274_v49  ;;  %306 = vst.msk [vmem:[#allocation8 + $0x36] sm:$0xff] %vm275_vm8, %v299_v50 }
  0xd5   :  { %286 = vst.msk [vmem:[#allocation8 + $0x18] sm:$0xff] %vm275_vm8, %v281_v47  ;;  %v241_v58 = vsel %vm233_vm4, %v239_v52, %v240_v46 }
  0xd6   :  { %297 = vst.msk [vmem:[#allocation8 + $0x6e] sm:$0x3] %vm293_vm6, %v274_v49  ;;  %v250_v60 = vadd.f32 %v241_v58, %v225_v51  ;;  %v251_v61 = vadd.f32 %v243_v59, %v226_v55  ;;  %310 = vst.msk [vmem:[#allocation8 + $0x7e] sm:$0x3] %vm293_vm6, %v303_v57 }
  0xd7   :  { %309 = vst.msk [vmem:[#allocation8 + $0x76] sm:$0xff] %vm275_vm8, %v302_v56 }
  0xd8   :  { %278 = vst.msk [vmem:[#allocation8 + $0x40] sm:$0xff] %vm275_vm8, %v250_v60  ;;  %279 = vst.msk [vmem:[#allocation8 + $0x48] sm:$0xff] %vm275_vm8, %v251_v61  ;;  %v282_v62 = vsub.f32 0.0, %v250_v60  ;;  %v283_v63 = vsub.f32 0.0, %v251_v61 }
  0xda   :  { %287 = vst.msk [vmem:[#allocation8 + $0x50] sm:$0xff] %vm275_vm8, %v282_v62  ;;  %288 = vst.msk [vmem:[#allocation8 + $0x58] sm:$0xff] %vm275_vm8, %v283_v63 }
  0xdb   :  { %422 = shalt.err (!%p419_p6)
}
  0xdc   :  { %s423_s8 = scalar_lea.hbm %s600_s3, 2048 }
  0xdd   :  { %p424_p7 = scmp.ne.s32.totalorder %s600_s3, %s423_s8  ;;  %p427_p8 = scmp.lt.u32.totalorder %s423_s8, %s600_s3 }
  0xdf   :  { %p429_p9 = pnand %p427_p8, %p424_p7 }
  0xe1   :  { %432 = shalt.err (!%p429_p9)
}
  0xe2   :  { %322 = dma.vmem_to_hbm [thread:$0]  %s317_s4, 2048, %s600_s3, [#allocation4], %s442_s28, %s442_s28, %s443_s29  }
  0xe3   :  { %437 = dma.done.wait [#allocation4], 2048  }
  0xe4   :  { %438 = vsyncadd [#allocation4], 4294965248 }
  0xe5   :  { %326 = vsyncpa [#allocation3], 1 }
  0xe6   :  { %327 = vsyncpa [#allocation6], 1 }
  0xe7   :  { %328 = vsyncpa [#allocation4], 1 }

</bundles_post_ra>
